<compile_context>
chip_gen: v7x
topology: tpu7x:2x2x1
jax: 0.10.0
libtpu: 0.0.40
codegen_flags: <defaults>
</compile_context>

<pallas_src>
import jax
import jax.numpy as jnp
from jax.experimental import pallas as pl
from jax.experimental.pallas import tpu as pltpu

LANE = 128


def _round_up(x, m):
    return ((x + m - 1) // m) * m


def _padded_block_bytes(shape, dtype):
    """VMEM bytes of one block after (8, 128) layout padding."""
    padded = list(shape)
    if len(padded) >= 2:
        padded[-1] = _round_up(padded[-1], 128)
        padded[-2] = _round_up(padded[-2], 8)
    elif len(padded) == 1:
        padded[0] = _round_up(padded[0], 128)
    n = 1
    for s in padded:
        n *= int(s)
    return n * jnp.dtype(dtype).itemsize


def _vmem_limit(block_shapes_dtypes):
    """Right-size the VMEM limit: 2x (double buffer) every block + headroom,
    floored at 8 MiB, capped at 48 MiB (below v7x's 64 MiB physical)."""
    total = sum(_padded_block_bytes(s, d) for s, d in block_shapes_dtypes)
    return int(min(48 << 20, max(8 << 20, 2 * total + (2 << 20))))


# ----------------------------------------------------------------------------
# Kernel 1:  H_rows = relu( (A_rows @ X) @ W1 + b1 )
#   Aggregate-first ordering ((A@X)@W1) keeps per-row-tile FLOPs minimal and
#   avoids recomputing X@W1 in every grid step.
# ----------------------------------------------------------------------------
def _gcn_layer1_kernel(adj_ref, x_ref, w1_ref, b1_ref, h_ref):
    agg = jnp.dot(adj_ref[...], x_ref[...],
                  preferred_element_type=jnp.float32)            # (tm, Fin) f32
    h = jnp.dot(agg.astype(jnp.bfloat16), w1_ref[...],
                preferred_element_type=jnp.float32) + b1_ref[...]  # (tm, Hp)
    h_ref[...] = jnp.maximum(h, 0.0).astype(h_ref.dtype)          # ReLU: 1 VPU max


# ----------------------------------------------------------------------------
# Kernel 2:  Z_rows = (A_rows @ H) @ W2 + b2 ; log_softmax / softmax (classes)
#   Padded class columns carry a -1e30 bias (set in the wrapper) so they do
#   not perturb the softmax over the real classes.
# ----------------------------------------------------------------------------
def _gcn_layer2_kernel(adj_ref, h_ref, w2_ref, b2_ref, logsm_ref, sm_ref):
    agg = jnp.dot(adj_ref[...], h_ref[...],
                  preferred_element_type=jnp.float32)            # (tm, Hp) f32
    z = jnp.dot(agg.astype(jnp.bfloat16), w2_ref[...],
                preferred_element_type=jnp.float32) + b2_ref[...]  # (tm, Cp)
    m = jnp.max(z, axis=-1, keepdims=True)
    zc = z - m
    logsm = zc - jnp.log(jnp.sum(jnp.exp(zc), axis=-1, keepdims=True))
    logsm_ref[...] = logsm
    sm_ref[...] = jnp.exp(logsm)          # exact softmax, rows sum to 1


# ----------------------------------------------------------------------------
# Wrapper: padding, bf16 casts, row-tiled pallas_calls, un-padding.
# ----------------------------------------------------------------------------
def gcn_forward(adj, x, w1, b1, w2, b2, *, row_tile=128):
    N = adj.shape[0]
    Fin = x.shape[1]
    H = w1.shape[1]
    C = w2.shape[1]

    tm = min(row_tile, _round_up(N, 16))          # multiple of 16 (bf16 packing)
    Np = _round_up(N, tm)
    Hp = _round_up(H, LANE)                       # lane-dense hidden axis
    Cp = _round_up(C, LANE)                       # lane-dense class axis
    grid = (Np // tm,)

    # --- pad & cast MXU operands to bf16 (f32 accumulation in-kernel) -------
    adj_p = jnp.zeros((Np, Np), jnp.bfloat16).at[:N, :N].set(
        adj.astype(jnp.bfloat16))
    x_p = jnp.zeros((Np, Fin), jnp.bfloat16).at[:N, :].set(
        x.astype(jnp.bfloat16))
    w1_p = jnp.zeros((Fin, Hp), jnp.bfloat16).at[:, :H].set(
        w1.astype(jnp.bfloat16))
    b1_p = jnp.zeros((1, Hp), jnp.float32).at[:, :H].set(
        jnp.asarray(b1, jnp.float32).reshape(1, H))
    w2_p = jnp.zeros((Hp, Cp), jnp.bfloat16).at[:H, :C].set(
        w2.astype(jnp.bfloat16))
    # Padded class logits -> -1e30 so they vanish under softmax.
    b2_p = jnp.full((1, Cp), -1e30, jnp.float32).at[:, :C].set(
        jnp.asarray(b2, jnp.float32).reshape(1, C))

    # ------------------------------- layer 1 --------------------------------
    l1_blocks = [((tm, Np), jnp.bfloat16), ((Np, Fin), jnp.bfloat16),
                 ((Fin, Hp), jnp.bfloat16), ((1, Hp), jnp.float32),
                 ((tm, Hp), jnp.bfloat16)]
    h_pad = pl.pallas_call(
        _gcn_layer1_kernel,
        out_shape=jax.ShapeDtypeStruct((Np, Hp), jnp.bfloat16),
        grid=grid,
        in_specs=[
            pl.BlockSpec((tm, Np), lambda i: (i, 0)),     # adjacency row tile
            pl.BlockSpec((Np, Fin), lambda i: (0, 0)),    # X (VMEM-resident)
            pl.BlockSpec((Fin, Hp), lambda i: (0, 0)),    # W1 (resident)
            pl.BlockSpec((1, Hp), lambda i: (0, 0)),      # b1 (resident)
        ],
        out_specs=pl.BlockSpec((tm, Hp), lambda i: (i, 0)),
        compiler_params=pltpu.CompilerParams(
            dimension_semantics=("parallel",),
            vmem_limit_bytes=_vmem_limit(l1_blocks)),
        cost_estimate=pl.CostEstimate(
            flops=int(2 * Np * Np * Fin + 2 * Np * Fin * Hp),
            transcendentals=0,
            bytes_accessed=int(2 * (Np * Np + Np * Fin + Fin * Hp + Np * Hp)
                               + 4 * Hp)),
    )(adj_p, x_p, w1_p, b1_p)

    # ------------------------------- layer 2 --------------------------------
    l2_blocks = [((tm, Np), jnp.bfloat16), ((Np, Hp), jnp.bfloat16),
                 ((Hp, Cp), jnp.bfloat16), ((1, Cp), jnp.float32),
                 ((tm, Cp), jnp.float32), ((tm, Cp), jnp.float32)]
    logsm_pad, sm_pad = pl.pallas_call(
        _gcn_layer2_kernel,
        out_shape=(jax.ShapeDtypeStruct((Np, Cp), jnp.float32),
                   jax.ShapeDtypeStruct((Np, Cp), jnp.float32)),
        grid=grid,
        in_specs=[
            pl.BlockSpec((tm, Np), lambda i: (i, 0)),     # adjacency row tile
            pl.BlockSpec((Np, Hp), lambda i: (0, 0)),     # H (VMEM-resident)
            pl.BlockSpec((Hp, Cp), lambda i: (0, 0)),     # W2 (resident)
            pl.BlockSpec((1, Cp), lambda i: (0, 0)),      # b2 (resident)
        ],
        out_specs=(pl.BlockSpec((tm, Cp), lambda i: (i, 0)),
                   pl.BlockSpec((tm, Cp), lambda i: (i, 0))),
        compiler_params=pltpu.CompilerParams(
            dimension_semantics=("parallel",),
            vmem_limit_bytes=_vmem_limit(l2_blocks)),
        cost_estimate=pl.CostEstimate(
            flops=int(2 * Np * Np * Hp + 2 * Np * Hp * Cp),
            transcendentals=int(2 * Np * Cp),
            bytes_accessed=int(2 * (Np * Np + Np * Hp + Hp * Cp)
                               + 4 * (Cp + 2 * Np * Cp))),
    )(adj_p, h_pad, w2_p, b2_p)

    # Un-pad: drop padded nodes and padded class columns.
    return logsm_pad[:N, :C], sm_pad[:N, :C]


# ----------------------------------------------------------------------------
# Graph preprocessing (plain JAX): edge_index -> D^{-1/2} (A + I) D^{-1/2}
# Duplicate edges are summed; self-loops added only where missing (gcn_norm).
# ----------------------------------------------------------------------------
def build_normalized_adjacency(edge_index, num_nodes):
    src, dst = edge_index[0], edge_index[1]
    a = jnp.zeros((num_nodes, num_nodes), jnp.float32)
    a = a.at[dst, src].add(1.0)                              # message src -> dst
    diag = jnp.diagonal(a)
    a = a + jnp.diag(jnp.where(diag > 0.0, 0.0, 1.0))        # remaining self-loops
    deg = a.sum(axis=1)
    d_inv_sqrt = jnp.where(deg > 0.0, jax.lax.rsqrt(deg), 0.0)
    return d_inv_sqrt[:, None] * a * d_inv_sqrt[None, :]


# ----------------------------------------------------------------------------
# Pure-JAX f32 reference (same op order as the PyTorch module)
# ----------------------------------------------------------------------------
def gcn_reference(adj, x, w1, b1, w2, b2):
    h = jnp.maximum(adj @ (x @ w1) + b1, 0.0)
    z = adj @ (h @ w2) + b2
    return jax.nn.log_softmax(z, axis=1), jax.nn.softmax(z, axis=1)


if __name__ == "__main__":
    # Small graph, sized so the row-tiled grid is non-trivial (grid=(2,)).
    N = 200
    num_features = 16
    hidden = 32
    num_classes = 7
    E = 800                      # directed edges (symmetrized below)

    key = jax.random.PRNGKey(0)
    k_x, k_e1, k_e2, k_w1, k_w2 = jax.random.split(key, 5)

    features = jax.random.normal(k_x, (N, num_features), dtype=jnp.float32)

    src = jax.random.randint(k_e1, (E,), 0, N)
    dst = jax.random.randint(k_e2, (E,), 0, N)
    edge_index = jnp.stack([jnp.concatenate([src, dst]),
                            jnp.concatenate([dst, src])], axis=0)

    # GCNConv parameters: glorot weights, zero bias (as in reset_parameters()).
    def glorot(k, shape):
        bound = (6.0 / (shape[0] + shape[1])) ** 0.5
        return jax.random.uniform(k, shape, minval=-bound, maxval=bound,
                                  dtype=jnp.float32)

    w1 = glorot(k_w1, (num_features, hidden))
    b1 = jnp.zeros((hidden,), dtype=jnp.float32)
    w2 = glorot(k_w2, (hidden, num_classes))
    b2 = jnp.zeros((num_classes,), dtype=jnp.float32)

    # Preprocess the graph once (cached normalization, as PyG does).
    adj = build_normalized_adjacency(edge_index, N)

    log_sm, sm = gcn_forward(adj, features, w1, b1, w2, b2)
    jax.block_until_ready((log_sm, sm))

    ref_ls, ref_sm = gcn_reference(adj, features, w1, b1, w2, b2)
    assert log_sm.shape == (N, num_classes)
    assert sm.shape == (N, num_classes)
    # bf16 MXU operands (f32 accumulation) vs pure-f32 reference.
    assert jnp.allclose(log_sm, ref_ls, atol=3e-2, rtol=3e-2), \
        float(jnp.max(jnp.abs(log_sm - ref_ls)))
    assert jnp.allclose(sm, ref_sm, atol=1e-2, rtol=1e-2), \
        float(jnp.max(jnp.abs(sm - ref_sm)))
    # Exact softmax (exp(log_softmax)) -> rows sum to 1.
    assert jnp.allclose(sm.sum(axis=1), 1.0, atol=1e-3)

    print("KERNEL_OK")
</pallas_src>

<mosaic_0001>
module attributes {stable_mosaic.version = 11 : i64} {
  func.func @_gcn_layer1_kernel(%arg0: i32, %arg1: memref<128x256xbf16, #tpu.memory_space<vmem>>, %arg2: memref<256x16xbf16, #tpu.memory_space<vmem>>, %arg3: memref<16x128xbf16, #tpu.memory_space<vmem>>, %arg4: memref<1x128xf32, #tpu.memory_space<vmem>>, %arg5: memref<128x128xbf16, #tpu.memory_space<vmem>>) attributes {dimension_semantics = [#tpu.dimension_semantics<parallel>], iteration_bounds = array<i64: 2>, scalar_prefetch = 0 : i64, scratch_operands = 0 : i64, tpu.core_type = #tpu.core_type<tc>, window_params = [{transform_indices = @transform_0, window_bounds = array<i64: 128, 256>}, {pipeline_mode = #tpu.pipeline_mode<synchronous>, transform_indices = @transform_1, window_bounds = array<i64: 256, 16>}, {pipeline_mode = #tpu.pipeline_mode<synchronous>, transform_indices = @transform_2, window_bounds = array<i64: 16, 128>}, {pipeline_mode = #tpu.pipeline_mode<synchronous>, transform_indices = @transform_3, window_bounds = array<i64: 1, 128>}, {transform_indices = @transform_4, window_bounds = array<i64: 128, 128>}]} {
    %c0 = arith.constant 0 : index
    %c0_0 = arith.constant 0 : index
    %0 = vector.load %arg1[%c0, %c0_0] : memref<128x256xbf16, #tpu.memory_space<vmem>>, vector<128x256xbf16>
    %c0_1 = arith.constant 0 : index
    %c0_2 = arith.constant 0 : index
    %1 = vector.load %arg2[%c0_1, %c0_2] : memref<256x16xbf16, #tpu.memory_space<vmem>>, vector<256x16xbf16>
    %cst = arith.constant dense<0.000000e+00> : vector<128x16xf32>
    %2 = tpu.matmul %0, %1, %cst {dimension_numbers = #tpu.dot_dimension_numbers<[1], [0], [0], [1], [0, 0, 1, 1], [], []>} : vector<128x256xbf16>, vector<256x16xbf16>, vector<128x16xf32> -> vector<128x16xf32>
    %3 = arith.truncf %2 : vector<128x16xf32> to vector<128x16xbf16>
    %c0_3 = arith.constant 0 : index
    %c0_4 = arith.constant 0 : index
    %4 = vector.load %arg3[%c0_3, %c0_4] : memref<16x128xbf16, #tpu.memory_space<vmem>>, vector<16x128xbf16>
    %cst_5 = arith.constant dense<0.000000e+00> : vector<128x128xf32>
    %5 = tpu.matmul %3, %4, %cst_5 {dimension_numbers = #tpu.dot_dimension_numbers<[1], [0], [0], [1], [0, 0, 1, 1], [], []>} : vector<128x16xbf16>, vector<16x128xbf16>, vector<128x128xf32> -> vector<128x128xf32>
    %c0_6 = arith.constant 0 : index
    %c0_7 = arith.constant 0 : index
    %6 = vector.load %arg4[%c0_6, %c0_7] : memref<1x128xf32, #tpu.memory_space<vmem>>, vector<1x128xf32>
    %7 = vector.broadcast %6 : vector<1x128xf32> to vector<128x128xf32>
    %8 = arith.addf %5, %7 : vector<128x128xf32>
    %cst_8 = arith.constant 0.000000e+00 : f32
    %9 = vector.broadcast %cst_8 : f32 to vector<128x128xf32>
    %10 = arith.maximumf %8, %9 : vector<128x128xf32>
    %11 = arith.truncf %10 : vector<128x128xf32> to vector<128x128xbf16>
    %c0_9 = arith.constant 0 : index
    %c0_10 = arith.constant 0 : index
    %12 = vector.load %arg5[%c0_9, %c0_10] : memref<128x128xbf16, #tpu.memory_space<vmem>>, vector<128x128xbf16>
    tpu.vector_store %arg5[%c0_9, %c0_10], %11 {strides = array<i32>} : memref<128x128xbf16, #tpu.memory_space<vmem>>, vector<128x128xbf16>,
    return
  }
  func.func @transform_0(%arg0: i32) -> (i32, i32) {
    %c0_i32 = arith.constant 0 : i32
    %c0_i32_0 = arith.constant 0 : i32
    return %arg0, %c0_i32 : i32, i32
  }
  func.func @transform_1(%arg0: i32) -> (i32, i32) {
    %c0_i32 = arith.constant 0 : i32
    %c0_i32_0 = arith.constant 0 : i32
    %c0_i32_1 = arith.constant 0 : i32
    return %c0_i32, %c0_i32_0 : i32, i32
  }
  func.func @transform_2(%arg0: i32) -> (i32, i32) {
    %c0_i32 = arith.constant 0 : i32
    %c0_i32_0 = arith.constant 0 : i32
    %c0_i32_1 = arith.constant 0 : i32
    return %c0_i32, %c0_i32_0 : i32, i32
  }
  func.func @transform_3(%arg0: i32) -> (i32, i32) {
    %c0_i32 = arith.constant 0 : i32
    %c0_i32_0 = arith.constant 0 : i32
    %c0_i32_1 = arith.constant 0 : i32
    return %c0_i32, %c0_i32_0 : i32, i32
  }
  func.func @transform_4(%arg0: i32) -> (i32, i32) {
    %c0_i32 = arith.constant 0 : i32
    %c0_i32_0 = arith.constant 0 : i32
    return %arg0, %c0_i32 : i32, i32
  }
}

</mosaic_0001>

<bundles_post_ra>
// kernel: tpu_custom_call.1
= control target key start
LH: loop header
LB: loop body
LE: loop exit
PB: predicated region body
PF: predicated region fallthrough
CT: control target
= control target key end

     0   :  { %9 = vsyncpa [#allocation3], 0  ;;  %s1589_s0 = inlined_call_operand.hbm [shape: bf16[256,256], index: 0, kind: input, shape index: {}]   ;;  %s1590_s1 = inlined_call_operand.vmem [shape: bf16[256,16], index: 1, kind: input, shape index: {}]   ;;  %s1591_s2 = inlined_call_operand.vmem [shape: bf16[16,128], index: 2, kind: input, shape index: {}]   ;;  %s1592_s3 = inlined_call_operand.vmem [shape: f32[1,128], index: 3, kind: input, shape index: {}]   ;;  %s1593_s4 = inlined_call_operand.hbm [shape: bf16[256,128], index: 4, kind: output, shape index: {}]  }
   0x1   :  { %11 = vsyncpa [#allocation3 + $0x1], 0 }
   0x2   :  { %12 = vsyncpa [#allocation4], 0 }
   0x3   :  { %14 = vsyncpa [#allocation4 + $0x1], 0  ;;  %s1335_s15 = smov 0   ;;  %s1337_s16 = smov 0  }
   0x4   :  { %s1339_s17 = smov 0   ;;  %s1341_s18 = smov 0  }
   0x5 LB: > { %s1356_s19 = sadd.s32 4294967295, %s1302_s18   ;;  %s869_s20 = sadd.s32 4294967294, %s1302_s18   ;;  %s1302_s18 = sphi %s1341_s18, %s1606_s18   ;;  %s1298_s17 = sphi %s1339_s17, %s1605_s17   ;;  %s1294_s16 = sphi %s1337_s16, %s1604_s16   ;;  %s1290_s15 = sphi %s1335_s15, %s1603_s15  }
   0x6   : > { %s1360_s21 = sadd.s32 1, %s1302_s18   ;;  %s27_s22 = sadd.s32 1, %s1298_s17 }
   0x7   : > { %s24_s23 = ssub.s32 %s1302_s18, %s1360_s21  ;;  %p34_p0 = scmp.ne.s32.totalorder %s1298_s17, %s1294_s16 }
   0x8   : > { %p25_p1 = scmp.eq.s32.totalorder %s24_s23, 0  ;;  %p35_p2 = scmp.eq.s32.totalorder %s1302_s18, 0 }
   0x9   : > { %p40_p3 = scmp.ne.s32.totalorder %s1294_s16, %s1290_s15  ;;  %p41_p4 = scmp.eq.s32.totalorder %s1356_s19, 0 }
   0xa   : > { %s1372_s24 = scalar_select %p25_p1, %s1298_s17, %s27_s22  }
   0xb   : > { %p1374_p5 = por %p35_p2, %p34_p0  ;;  %p1378_p6 = por %p41_p4, %p40_p3 }
   0xc   : > { %p127_p7 = scmp.eq.s32.totalorder %s1356_s19, 1  ;;  %p133_p8 = scmp.eq.s32.totalorder %s869_s20, 1 }
   0xd   : > { %p1127_p10 = scmp.lt.s32.totalorder %s1302_s18, 2  ;;  %s162_s29 = sand.u32 1, %s1298_s17  }
   0xe   : > { %p1385_p11 = por %p127_p7, %p34_p0  ;;  %p1389_p12 = por %p133_p8, %p40_p3 }
   0xf   : > { %s943_s30 = sshll.u32 %s1302_s18, 11  ;;  %s872_s5 = sshll.u32 %s162_s29, 7 }
  0x10   : > { %s1597_s27 = scalar_select %p1385_p11, 1, 0 }
  0x11   : > { %s1598_s28 = scalar_select %p1389_p12, 1, 0 }
  0x12   : > { %s1398_s8 = scalar_lea.hbm %s1589_s0, %s943_s30  ;;  %s166_s9 = scalar_lea.vmem [#allocation2], %s872_s5 }
  0x13   : > { %s174_s10 = sshll.u32 %s166_s9, 4  ;;  %p1402_p13 = pnand %p1127_p10, %p1374_p5  ;;  %s1406_s10 = int_to_ptr.vmem [resolvable:$true] %s174_s10 }
  0x14   : > { %s1408_s12 = scalar_lea.sflag [#allocation3], %s162_s29  ;;  %s1206_s13 = scalar_lea.hbm %s1398_s8, 2048 }
  0x15   : > { %p1207_p0 = scmp.ne.s32.totalorder %s1398_s8, %s1206_s13  ;;  %p1208_p1 = pneg %p1402_p13 }
  0x16   : > { %s1211_s22 = scalar_lea.hbm %s1589_s0, 4096  ;;  %p1212_p4 = scmp.lt.u32.totalorder %s1398_s8, %s1589_s0 }
  0x17   : > { %p1209_p2 = pnand %p1208_p1, %p1207_p0  ;;  %p1213_p5 = scmp.lt.u32.totalorder %s1211_s22, %s1206_s13 }
  0x18   : > { %p1215_p8 = scmp.lt.u32.totalorder %s1206_s13, %s1398_s8 }
  0x19   : > { %p1210_p3 = pneg %p1209_p2  ;;  %p1214_p7 = por %p1213_p5, %p1212_p4 }
  0x1b   : > { %p1216_p10 = por %p1215_p8, %p1214_p7 }
  0x1d   : > { %p1217_p9 = pnand %p1216_p10, %p1210_p3 }
  0x1f   : > { %1220 = shalt.err (!%p1217_p9)
}
  0x20   : > { %s1221_s29 = scalar_lea.vmem %s1406_s10, 2048  ;;  %s1304_s30 = smov [#allocation2]  }
  0x21   : > { %p1222_p0 = scmp.ne.s32.totalorder %s1406_s10, %s1221_s29  ;;  %s1226_s5 = sshll.u32 %s1304_s30, 4  ;;  %s1227_s5 = int_to_ptr.vmem [resolvable:$false] %s1226_s5 }
  0x22   : > { %s1228_s6 = scalar_lea.vmem %s1227_s5, 4096  ;;  %p1229_p11 = scmp.lt.s32.totalorder %s1406_s10, %s1227_s5 }
  0x23   : > { %p1224_p2 = pnand %p1222_p0, %p1208_p1  ;;  %p1230_p4 = scmp.lt.s32.totalorder %s1228_s6, %s1221_s29 }
  0x25   : > { %p1225_p12 = pneg %p1224_p2  ;;  %p1231_p5 = por %p1230_p4, %p1229_p11 }
  0x27   : > { %p1232_p7 = pnand %p1231_p5, %p1225_p12 }
  0x29   : > { %1235 = shalt.err (!%p1232_p7)
}
  0x2a   : > { %s1305_s7 = smov 128   ;;  %s1306_s9 = smov 8  }
  0x2b   : > { %1122 = dma.hbm_to_vmem [thread:$0]  (!%p1402_p13), %s1398_s8, 2048, %s1406_s10, %s1408_s12, %s1305_s7, %s1305_s7, %s1306_s9  }
  0x2c   : > { %p876_p9 = scmp.ge.s32.totalorder %s1302_s18, 1  ;;  %p182_p1 = scmp.lt.s32.totalorder %s1302_s18, 3 }
  0x2e   : > { %p183_p3 = pnand %p876_p9, %p182_p1 }
  0x2f   : > { %s1439_s13 = sand.u32 (!%p183_p3), 1, %s1294_s16  }
  0x30   : > { %186 = sbr.rel (%p183_p3) target bundleno = 592 (0x250), region = 36  ;;  %s877_s14 = sshll.u32 (!%p183_p3), %s1439_s13, 7 }
  0x31   : > { %s189_s20 = scalar_lea.sflag (!%p183_p3), [#allocation3], %s1439_s13  ;;  %s1443_s22 = scalar_lea.vmem (!%p183_p3), [#allocation2], %s877_s14 }
  0x37   : > { %1281 = dma.done.wait (%p1378_p6), %s189_s20, 2048  }
  0x38   : > { %1283 = vsyncadd (%p1378_p6), %s189_s20, 4294965248  ;;  %v1165_v0 = vld [vmem:[%s1590_s1 + $0x40] sm:$0xff]   ;;  %v1167_v2 = vld [vmem:[%s1590_s1 + $0x48] sm:$0xff]   ;;  %vm564_vm0 = vcmask 130048   ;;  %s878_s25 = sshll.u32 %s1439_s13, 6  ;;  %s960_s26 = sshll.u32 %s1356_s19, 10 }
  0x39   : > { %v1166_v1 = vld [vmem:[%s1590_s1] sm:$0xff]   ;;  %1008 = vmatprep.subr.bf16.mxu0 %v1165_v0  ;;  %1099 = vmatprep.subr.bf16.mxu1 %v1165_v0  ;;  %v1168_v3 = vld [vmem:[%s1590_s1 + $0x8] sm:$0xff]   ;;  %v1169_v4 = vld [vmem:[%s1590_s1 + $0x50] sm:$0xff]   ;;  %s1528_s29 = scalar_lea.vmem [#allocation5], %s878_s25  ;;  %s1543_s7 = scalar_lea.hbm %s1593_s4, %s960_s26 }
  0x3a   : > { %1009 = vmatpush3.bf16.msra.mxu0 %v1166_v1  ;;  %1107 = vmatpush3.bf16.msra.mxu1 %v1166_v1  ;;  %v1170_v5 = vld [vmem:[%s1590_s1 + $0x10] sm:$0xff]   ;;  %v1171_v6 = vld [vmem:[%s1590_s1 + $0x58] sm:$0xff]   ;;  %v1173_v8 = vld [vmem:[%s1590_s1 + $0x60] sm:$0xff]   ;;  %s796_s30 = sshll.u32 %s1528_s29, 4  ;;  %s783_s9 = scalar_lea.sflag [#allocation4], %s1439_s13  ;;  %s1538_s30 = int_to_ptr.vmem [resolvable:$true] %s796_s30 }
  0x3b   : > { %1010 = vmatprep.subr.bf16.mxu0 %v1167_v2  ;;  %1100 = vmatprep.subr.bf16.mxu1 %v1167_v2  ;;  %v1172_v7 = vld [vmem:[%s1590_s1 + $0x18] sm:$0xff]   ;;  %v1174_v9 = vld [vmem:[%s1590_s1 + $0x20] sm:$0xff]   ;;  %v1175_v10 = vld [vmem:[%s1590_s1 + $0x68] sm:$0xff]   ;;  %s1236_s19 = scalar_lea.vmem %s1538_s30, 1024  ;;  %p1600_p11 = scmp.ne.s32.totalorder %s1597_s27, 0 }
  0x3c   : > { %v1183_v11 = vld [vmem:[%s1443_s22 + $0x4] ss:$8 sps:$4 sm:$0xff]   ;;  %v1177_v13 = vld [vmem:[%s1590_s1 + $0x70] sm:$0xff]   ;;  %v1179_v16 = vld [vmem:[%s1590_s1 + $0x78] sm:$0xff]   ;;  %p1237_p6 = scmp.ne.s32.totalorder %s1538_s30, %s1236_s19  ;;  %s1307_s14 = smov [#allocation5]  }
  0x3d   : > { %v1176_v12 = vld [vmem:[%s1590_s1 + $0x28] sm:$0xff]   ;;  %476 = vmatprep.mubr.bf16.mxu0 %v1183_v11  ;;  %v1178_v14 = vld [vmem:[%s1590_s1 + $0x30] sm:$0xff]   ;;  %v1180_v17 = vld [vmem:[%s1590_s1 + $0x38] sm:$0xff]   ;;  %s1240_s20 = sshll.u32 %s1307_s14, 4  ;;  %s1241_s20 = int_to_ptr.vmem [resolvable:$false] %s1240_s20 }
  0x3e   : > { %1011 = vmatpush3.bf16.msra.mxu0 %v1168_v3  ;;  %1108 = vmatpush3.bf16.msra.mxu1 %v1168_v3  ;;  %v1198_v15 = vld [vmem:[%s1443_s22 + $0x64] ss:$8 sps:$4 sm:$0xff]   ;;  %v1181_v18 = vld [vmem:[%s1443_s22] ss:$8 sps:$4 sm:$0xff]   ;;  %v1184_v19 = vld [vmem:[%s1443_s22 + $0x14] ss:$8 sps:$4 sm:$0xff]   ;;  %p1238_p12 = pnand %p1237_p6, %p1600_p11  ;;  %p1243_p8 = scmp.lt.s32.totalorder %s1538_s30, %s1241_s20 }
  0x3f   : > { %1012 = vmatprep.subr.bf16.mxu0 %v1169_v4  ;;  %1101 = vmatprep.subr.bf16.mxu1 %v1169_v4  ;;  %v1196_v20 = vld [vmem:[%s1443_s22 + $0x60] ss:$8 sps:$4 sm:$0xff]   ;;  %v1202_v21 = vld [vmem:[%s1443_s22 + $0x74] ss:$8 sps:$4 sm:$0xff]   ;;  %v1186_v22 = vld [vmem:[%s1443_s22 + $0x10] ss:$8 sps:$4 sm:$0xff]  }
  0x40   : > { %524 = vmatprep.mubr.bf16.mxu1 %v1198_v15  ;;  %v1187_v23 = vld [vmem:[%s1443_s22 + $0x24] ss:$8 sps:$4 sm:$0xff]   ;;  %v1204_v24 = vld [vmem:[%s1443_s22 + $0x70] ss:$8 sps:$4 sm:$0xff]   ;;  %v1189_v25 = vld [vmem:[%s1443_s22 + $0x20] ss:$8 sps:$4 sm:$0xff]   ;;  %p1239_p13 = pneg %p1238_p12 }
  0x41   : > { %v1190_v26 = vld [vmem:[%s1443_s22 + $0x34] ss:$8 sps:$4 sm:$0xff]   ;;  %v1192_v27 = vld [vmem:[%s1443_s22 + $0x30] ss:$8 sps:$4 sm:$0xff]   ;;  %v1193_v28 = vld [vmem:[%s1443_s22 + $0x44] ss:$8 sps:$4 sm:$0xff]  }
  0x42   : > { %1013 = vmatpush3.bf16.msra.mxu0 %v1170_v5  ;;  %1109 = vmatpush3.bf16.msra.mxu1 %v1170_v5  ;;  %v1195_v29 = vld [vmem:[%s1443_s22 + $0x40] ss:$8 sps:$4 sm:$0xff]   ;;  %v1199_v30 = vld [vmem:[%s1443_s22 + $0x54] ss:$8 sps:$4 sm:$0xff]   ;;  %v1201_v31 = vld [vmem:[%s1443_s22 + $0x50] ss:$8 sps:$4 sm:$0xff]  }
  0x43   : > { %1014 = vmatprep.subr.bf16.mxu0 %v1171_v6  ;;  %1102 = vmatprep.subr.bf16.mxu1 %v1171_v6  ;;  %v1205_v32 = vld [vmem:[%s1591_s2] sm:$0xff]   ;;  %s1242_s8 = scalar_lea.vmem %s1241_s20, 2048 }
  0x44   : > { %p1244_p10 = scmp.lt.s32.totalorder %s1242_s8, %s1236_s19 }
  0x46   : > { %1015 = vmatpush3.bf16.msra.mxu0 %v1172_v7  ;;  %1110 = vmatpush3.bf16.msra.mxu1 %v1172_v7  ;;  %p1245_p0 = por %p1244_p10, %p1243_p8 }
  0x47   : > { %1016 = vmatprep.subr.bf16.mxu0 %v1173_v8  ;;  %1103 = vmatprep.subr.bf16.mxu1 %v1173_v8 }
  0x48   : > { %p1246_p2 = pnand %p1245_p0, %p1239_p13 }
  0x4a   : > { %1017 = vmatpush3.bf16.msra.mxu0 %v1174_v9  ;;  %1111 = vmatpush3.bf16.msra.mxu1 %v1174_v9 }
  0x4b   : > { %1018 = vmatprep.subr.bf16.mxu0 %v1175_v10  ;;  %1104 = vmatprep.subr.bf16.mxu1 %v1175_v10 }
  0x4e   : > { %1019 = vmatpush3.bf16.msra.mxu0 %v1176_v12  ;;  %1112 = vmatpush3.bf16.msra.mxu1 %v1176_v12 }
  0x4f   : > { %1020 = vmatprep.subr.bf16.mxu0 %v1177_v13  ;;  %1105 = vmatprep.subr.bf16.mxu1 %v1177_v13 }
  0x52   : > { %1021 = vmatpush3.bf16.msra.mxu0 %v1178_v14  ;;  %1113 = vmatpush3.bf16.msra.mxu1 %v1178_v14 }
  0x53   : > { %1022 = vmatprep.subr.bf16.mxu0 %v1179_v16  ;;  %1106 = vmatprep.subr.bf16.mxu1 %v1179_v16 }
  0x56   : > { %1023 = vmatpush3.bf16.msra.mxu0 %v1180_v17  ;;  %1114 = vmatpush3.bf16.msra.mxu1 %v1180_v17 }
  0x57   : > { %1081 = vmatprep.subr.bf16.mxu1 %v1205_v32 }
  0x59   : > { %477 = vmatmul.mubr.bf16.vlgmr.msra.gmra.mrb[0].mxu0 %v1181_v18  ;;  %525 = vmatmul.mubr.bf16.vlgmr.msra.gmra.mrb[0].mxu1 %v1196_v20 }
  0x5a   : > { %484 = vmatprep.mubr.bf16.mxu0 %v1184_v19  ;;  %532 = vmatprep.mubr.bf16.mxu1 %v1202_v21 }
  0x5b   : > { %1082 = vmatpush3.bf16.msra.mxu1 %v1205_v32 }
  0x61   : > { %485 = vmatmul.mubr.bf16.gmra.mrb[4].mxu0 %v1186_v22  ;;  %533 = vmatmul.mubr.bf16.gmra.mrb[4].mxu1 %v1204_v24 }
  0x62   : > { %492 = vmatprep.mubr.bf16.mxu0 %v1187_v23 }
  0x69   : > { %493 = vmatmul.mubr.bf16.gmra.mrb[8].mxu0 %v1189_v25  ;;  %v911_v25 = vld [vmem:[%s1592_s3] ss:$0 sm:$0xff] }
  0x6a   : > { %500 = vmatprep.mubr.bf16.mxu0 %v1190_v26 }
  0x71   : > { %501 = vmatmul.mubr.bf16.gmra.mrb[12].mxu0 %v1192_v27 }
  0x72   : > { %508 = vmatprep.mubr.bf16.mxu0 %v1193_v28 }
  0x79   : > { %509 = vmatmul.mubr.bf16.gmra.mrb[16].mxu0 %v1195_v29 }
  0x7a   : > { %516 = vmatprep.mubr.bf16.mxu0 %v1199_v30 }
  0x81   : > { %517 = vmatmul.mubr.bf16.gmra.mrb[20].mxu0 %v1201_v31 }
 0x12c   : > { %v1024_v33 = vpop.f32.mrb[0].mxu0  ;;  %v1060_v35 = vpop.f32.mrb[0].mxu1 }
 0x12d   : > { %v1025_v34 = vpop.f32.mrb[1].mxu0  ;;  %v1061_v38 = vpop.f32.mrb[1].mxu1 }
 0x12e   : > { %v1026_v36 = vadd.f32 %v1025_v34, %v1024_v33  ;;  %v1027_v37 = vpop.f32.mrb[2].mxu0  ;;  %v1062_v40 = vadd.f32 %v1061_v38, %v1060_v35  ;;  %v1063_v41 = vpop.f32.mrb[2].mxu1 }
 0x12f   : > { %v1028_v39 = vpop.f32.mrb[3].mxu0  ;;  %v1064_v43 = vpop.f32.mrb[3].mxu1 }
 0x130   : > { %v1029_v42 = vadd.f32 %v1028_v39, %v1027_v37  ;;  %v1065_v44 = vadd.f32 %v1064_v43, %v1063_v41 }
 0x132   : > { %v541_v45 = vpack.c.bf16 %v1029_v42, %v1026_v36  ;;  %v547_v46 = vpack.c.bf16 %v1065_v44, %v1062_v40 }
 0x134   : > { %v1030_v47 = vpop.f32.mrb[4].mxu0  ;;  %1083 = vmatprep.mubr.msk.bf16.mxu1 %vm564_vm0, %v541_v45  ;;  %v1066_v49 = vpop.f32.mrb[4].mxu1 }
 0x135   : > { %v1031_v48 = vpop.f32.mrb[5].mxu0  ;;  %v1067_v52 = vpop.f32.mrb[5].mxu1 }
 0x136   : > { %v1032_v50 = vadd.f32 %v1031_v48, %v1030_v47  ;;  %v1033_v51 = vpop.f32.mrb[6].mxu0  ;;  %v1068_v54 = vadd.f32 %v1067_v52, %v1066_v49  ;;  %v1069_v55 = vpop.f32.mrb[6].mxu1 }
 0x137   : > { %v1034_v53 = vpop.f32.mrb[7].mxu0  ;;  %v1070_v57 = vpop.f32.mrb[7].mxu1 }
 0x138   : > { %v1035_v56 = vadd.f32 %v1034_v53, %v1033_v51  ;;  %v1071_v58 = vadd.f32 %v1070_v57, %v1069_v55 }
 0x13a   : > { %v542_v59 = vpack.c.bf16 %v1035_v56, %v1032_v50  ;;  %v548_v60 = vpack.c.bf16 %v1071_v58, %v1068_v54 }
 0x13c   : > { %v1036_v61 = vpop.f32.mrb[8].mxu0  ;;  %1084 = vmatmul.mubr.msk.bf16.vlgmr.msra.gmra.mrb[8].mxu1 %vm564_vm0, %v542_v59 }
 0x13d   : > { %v1037_v62 = vpop.f32.mrb[9].mxu0 }
 0x13e   : > { %v1038_v63 = vadd.f32 %v1037_v62, %v1036_v61  ;;  %v1039_v0 = vpop.f32.mrb[10].mxu0 }
 0x13f   : > { %v1040_v1 = vpop.f32.mrb[11].mxu0 }
 0x140   : > { %v1041_v2 = vadd.f32 %v1040_v1, %v1039_v0 }
 0x142   : > { %v543_v3 = vpack.c.bf16 %v1041_v2, %v1038_v63 }
 0x144   : > { %v1042_v4 = vpop.f32.mrb[12].mxu0  ;;  %1087 = vmatprep.mubr.msk.bf16.mxu1 %vm564_vm0, %v543_v3 }
 0x145   : > { %v1043_v5 = vpop.f32.mrb[13].mxu0 }
 0x146   : > { %v1044_v6 = vadd.f32 %v1043_v5, %v1042_v4  ;;  %v1045_v7 = vpop.f32.mrb[14].mxu0 }
 0x147   : > { %v1046_v8 = vpop.f32.mrb[15].mxu0 }
 0x148   : > { %v1047_v9 = vadd.f32 %v1046_v8, %v1045_v7 }
 0x14a   : > { %v544_v10 = vpack.c.bf16 %v1047_v9, %v1044_v6 }
 0x14c   : > { %v1048_v11 = vpop.f32.mrb[16].mxu0  ;;  %1088 = vmatmul.mubr.msk.bf16.gmra.mrb[12].mxu1 %vm564_vm0, %v544_v10 }
 0x14d   : > { %v1049_v12 = vpop.f32.mrb[17].mxu0 }
 0x14e   : > { %v1050_v13 = vadd.f32 %v1049_v12, %v1048_v11  ;;  %v1051_v14 = vpop.f32.mrb[18].mxu0 }
 0x14f   : > { %v1052_v15 = vpop.f32.mrb[19].mxu0 }
 0x150   : > { %v1053_v16 = vadd.f32 %v1052_v15, %v1051_v14 }
 0x152   : > { %v545_v17 = vpack.c.bf16 %v1053_v16, %v1050_v13 }
 0x154   : > { %v1054_v18 = vpop.f32.mrb[20].mxu0  ;;  %1091 = vmatprep.mubr.msk.bf16.mxu1 %vm564_vm0, %v545_v17 }
 0x155   : > { %v1055_v19 = vpop.f32.mrb[21].mxu0 }
 0x156   : > { %v1056_v20 = vadd.f32 %v1055_v19, %v1054_v18  ;;  %v1057_v21 = vpop.f32.mrb[22].mxu0 }
 0x157   : > { %v1058_v22 = vpop.f32.mrb[23].mxu0 }
 0x158   : > { %v1059_v23 = vadd.f32 %v1058_v22, %v1057_v21 }
 0x15a   : > { %v546_v24 = vpack.c.bf16 %v1059_v23, %v1056_v20 }
 0x15c   : > { %1092 = vmatmul.mubr.msk.bf16.gmra.mrb[16].mxu1 %vm564_vm0, %v546_v24 }
 0x15d   : > { %1095 = vmatprep.mubr.msk.bf16.mxu1 %vm564_vm0, %v547_v46 }
 0x164   : > { %1096 = vmatmul.mubr.msk.bf16.gmra.mrb[20].mxu1 %vm564_vm0, %v548_v60 }
 0x20f   : > { %v1085_v26 = vpop.f32.mrb[8].mxu1 }
 0x210   : > { %v632_v27 = vadd.f32 %v1085_v26, %v911_v25  ;;  %v623_v28 = vpop.f32.mrb[9].mxu1 }
 0x211   : > { %v624_v29 = vadd.f32 %v911_v25, %v623_v28  ;;  %v1086_v30 = vpop.f32.mrb[10].mxu1 }
 0x212   : > { %v635_v31 = vadd.f32 %v1086_v30, %v911_v25  ;;  %v626_v32 = vpop.f32.mrb[11].mxu1  ;;  %v688_v34 = vmax.f32 %v632_v27, 0.0 }
 0x213   : > { %v627_v33 = vadd.f32 %v911_v25, %v626_v32  ;;  %v686_v36 = vmax.f32 %v624_v29, 0.0 }
 0x214   : > { %v689_v35 = vmax.f32 %v635_v31, 0.0 }
 0x215   : > { %v687_v37 = vmax.f32 %v627_v33, 0.0 }
 0x216   : > { %v969_v38 = vpack.c.bf16 %v689_v35, %v688_v34 }
 0x217   : > { %v964_v39 = vpack.c.bf16 %v687_v37, %v686_v36 }
 0x218   : > { %1001 = vst [vmem:[%s1528_s29 + $0x8] sm:$0xff] %v969_v38  }
 0x219   : > { %965 = vst [vmem:[%s1528_s29] sm:$0xff] %v964_v39  }
 0x21f   : > { %v1089_v40 = vpop.f32.mrb[12].mxu1 }
 0x220   : > { %v648_v41 = vadd.f32 %v1089_v40, %v911_v25  ;;  %v639_v42 = vpop.f32.mrb[13].mxu1 }
 0x221   : > { %v640_v43 = vadd.f32 %v911_v25, %v639_v42  ;;  %v1090_v44 = vpop.f32.mrb[14].mxu1 }
 0x222   : > { %v651_v45 = vadd.f32 %v1090_v44, %v911_v25  ;;  %v642_v46 = vpop.f32.mrb[15].mxu1  ;;  %v692_v48 = vmax.f32 %v648_v41, 0.0 }
 0x223   : > { %v643_v47 = vadd.f32 %v911_v25, %v642_v46  ;;  %v690_v50 = vmax.f32 %v640_v43, 0.0 }
 0x224   : > { %v693_v49 = vmax.f32 %v651_v45, 0.0 }
 0x225   : > { %v691_v51 = vmax.f32 %v643_v47, 0.0 }
 0x226   : > { %v979_v52 = vpack.c.bf16 %v693_v49, %v692_v48 }
 0x227   : > { %v974_v53 = vpack.c.bf16 %v691_v51, %v690_v50 }
 0x228   : > { %1003 = vst [vmem:[%s1528_s29 + $0x18] sm:$0xff] %v979_v52  }
 0x229   : > { %1002 = vst [vmem:[%s1528_s29 + $0x10] sm:$0xff] %v974_v53  }
 0x22f   : > { %v1093_v54 = vpop.f32.mrb[16].mxu1 }
 0x230   : > { %v664_v55 = vadd.f32 %v1093_v54, %v911_v25  ;;  %v655_v56 = vpop.f32.mrb[17].mxu1 }
 0x231   : > { %v656_v57 = vadd.f32 %v911_v25, %v655_v56  ;;  %v1094_v58 = vpop.f32.mrb[18].mxu1 }
 0x232   : > { %v667_v59 = vadd.f32 %v1094_v58, %v911_v25  ;;  %v658_v60 = vpop.f32.mrb[19].mxu1  ;;  %v696_v62 = vmax.f32 %v664_v55, 0.0 }
 0x233   : > { %v659_v61 = vadd.f32 %v911_v25, %v658_v60  ;;  %v694_v0 = vmax.f32 %v656_v57, 0.0 }
 0x234   : > { %v697_v63 = vmax.f32 %v667_v59, 0.0 }
 0x235   : > { %v695_v1 = vmax.f32 %v659_v61, 0.0 }
 0x236   : > { %v989_v2 = vpack.c.bf16 %v697_v63, %v696_v62 }
 0x237   : > { %v984_v3 = vpack.c.bf16 %v695_v1, %v694_v0  ;;  %v1097_v4 = vpop.f32.mrb[20].mxu1 }
 0x238   : > { %1005 = vst [vmem:[%s1528_s29 + $0x28] sm:$0xff] %v989_v2   ;;  %v680_v5 = vadd.f32 %v1097_v4, %v911_v25  ;;  %v671_v6 = vpop.f32.mrb[21].mxu1 }
 0x239   : > { %1004 = vst [vmem:[%s1528_s29 + $0x20] sm:$0xff] %v984_v3   ;;  %v672_v7 = vadd.f32 %v911_v25, %v671_v6  ;;  %v1098_v8 = vpop.f32.mrb[22].mxu1 }
 0x23a   : > { %v683_v9 = vadd.f32 %v1098_v8, %v911_v25  ;;  %v674_v10 = vpop.f32.mrb[23].mxu1  ;;  %v700_v12 = vmax.f32 %v680_v5, 0.0 }
 0x23b   : > { %v675_v11 = vadd.f32 %v911_v25, %v674_v10  ;;  %v698_v14 = vmax.f32 %v672_v7, 0.0 }
 0x23c   : > { %v701_v13 = vmax.f32 %v683_v9, 0.0 }
 0x23d   : > { %v699_v15 = vmax.f32 %v675_v11, 0.0 }
 0x23e   : > { %v999_v16 = vpack.c.bf16 %v701_v13, %v700_v12 }
 0x23f   : > { %v994_v17 = vpack.c.bf16 %v699_v15, %v698_v14 }
 0x240   : > { %1007 = vst [vmem:[%s1528_s29 + $0x38] sm:$0xff] %v999_v16  }
 0x241   : > { %1006 = vst [vmem:[%s1528_s29 + $0x30] sm:$0xff] %v994_v17  }
 0x242   : > { %1249 = shalt.err (!%p1246_p2)
}
 0x243   : > { %s1250_s10 = scalar_lea.hbm %s1543_s7, 1024  ;;  %s1254_s22 = scalar_lea.hbm %s1593_s4, 2048 }
 0x244   : > { %p1251_p4 = scmp.ne.s32.totalorder %s1543_s7, %s1250_s10  ;;  %p1255_p9 = scmp.lt.u32.totalorder %s1543_s7, %s1593_s4 }
 0x245   : > { %p1256_p1 = scmp.lt.u32.totalorder %s1254_s22, %s1250_s10  ;;  %p1258_p6 = scmp.lt.u32.totalorder %s1250_s10, %s1543_s7 }
 0x246   : > { %p1252_p5 = pnand %p1251_p4, %p1600_p11 }
 0x247   : > { %p1257_p3 = por %p1256_p1, %p1255_p9 }
 0x248   : > { %p1253_p7 = pneg %p1252_p5 }
 0x249   : > { %p1259_p12 = por %p1258_p6, %p1257_p3 }
 0x24b   : > { %p1260_p13 = pnand %p1259_p12, %p1253_p7 }
 0x24d   : > { %1263 = shalt.err (!%p1260_p13)
}
 0x24e   : > { %s1308_s29 = smov 64   ;;  %s1309_s26 = smov 4  }
 0x24f   : > { %1117 = dma.vmem_to_hbm [thread:$0]  (%p1600_p11), %s1538_s30, 1024, %s1543_s7, %s783_s9, %s1308_s29, %s1308_s29, %s1309_s26  }
 0x250 PF: > { %s811_s5 = sand.u32 1, %s1290_s15   ;;  %p1601_p8 = scmp.ne.s32.totalorder %s1598_s28, 0 }
 0x251   : > { %p1602_p10 = scmp.ge.s32.totalorder %s1302_s18, 2  ;;  %s812_s6 = scalar_lea.sflag [#allocation4], %s811_s5 }
 0x253   : > { %p1124_p0 = pnand %p1602_p10, %p1601_p8 }
 0x255   : > { %1285 = dma.done.wait (!%p1124_p0), %s812_s6, 1024  }
 0x256   : > { %1287 = vsyncadd (!%p1124_p0), %s812_s6, 4294966272  ;;  %p17_p2 = scmp.ge.s32.totalorder %s1360_s21, 4   ;;  %s1603_s15 = smov %s1294_s16 }
 0x257   : > { %s1604_s16 = smov %s1298_s17  ;;  %s1605_s17 = smov %s1372_s24 }
 0x258   : > { %s1606_s18 = smov %s1360_s21  ;;  %19 = sbr.rel (!%p17_p2) target bundleno = 5 (0x5), region = 81 }
 0x25f   :  { %817 = vsyncpa [#allocation3], 1 }
 0x260   :  { %819 = vsyncpa [#allocation3 + $0x1], 1 }
 0x261   :  { %820 = vsyncpa [#allocation4], 1 }
 0x262   :  { %822 = vsyncpa [#allocation4 + $0x1], 1 }

</bundles_post_ra>
